<compile_context>
chip_gen: v6e
topology: v6e:2x2x1
jax: 0.10.0
libtpu: 0.0.40
codegen_flags: <defaults>
</compile_context>

<pallas_src>
import jax
import jax.numpy as jnp
from jax import lax
from jax.experimental import pallas as pl
from jax.experimental.pallas import tpu as pltpu

N_LAYERS = 8
FPAD = 16          # sublane-padded feature width (max real layer width is 10)
TB_MAX = 2048      # batch tile along the 128-lane axis (multiple of 128)


def mlp_kernel(x_ref, w_ref, b_ref, out_ref):
    # x_ref:   (FPAD, TB)            batch tile, features on sublanes
    # w_ref:   (8, FPAD, FPAD)       all layer weights, PyTorch (out, in) layout
    # b_ref:   (8, FPAD, 1)          all layer biases (lane-broadcast)
    # out_ref: (D, TB)               D = real feature width (10)
    h = x_ref[...]
    for i in range(N_LAYERS):                       # static unroll, fused layers
        w = w_ref[i]                                # (FPAD, FPAD), static index
        b = b_ref[i]                                # (FPAD, 1)
        h = jnp.dot(w, h,
                    preferred_element_type=jnp.float32,
                    precision=lax.Precision.HIGHEST) + b
        if i < N_LAYERS - 1:                        # fc8 has no activation
            h = jnp.tanh(h)
    # padded sublanes are exactly zero (zero weight rows / bias lanes, tanh(0)=0)
    out_ref[...] = h[: out_ref.shape[0], :]


def pack_params(weights, biases):
    """Zero-pad & pack params once (hoisted out of the forward path).

    weights[i]: (out_i, in_i)  == PyTorch nn.Linear weight layout
    biases[i]:  (out_i,)
    """
    w_packed = jnp.zeros((N_LAYERS, FPAD, FPAD), jnp.float32)
    b_packed = jnp.zeros((N_LAYERS, FPAD, 1), jnp.float32)
    for i, (W, b) in enumerate(zip(weights, biases)):
        dout, din = W.shape
        w_packed = w_packed.at[i, :dout, :din].set(W)
        b_packed = b_packed.at[i, :dout, 0].set(b)
    return w_packed, b_packed


def net_forward(x, w_packed, b_packed, *, tb_max=TB_MAX):
    """x: (B, D) float32. Returns (B, D) float32."""
    B, D = x.shape
    assert D <= FPAD
    B128 = ((B + 127) // 128) * 128                 # lane alignment
    TB = max(128, min(tb_max, B128))                # batch tile (multiple of 128)
    B_pad = ((B128 + TB - 1) // TB) * TB            # multiple of TB

    # Layout plumbing (once per call): transpose + pad features 10->16 and
    # batch B->B_pad.  This is the only HBM-side padding left.
    x_t = jnp.pad(x.T, ((0, FPAD - D), (0, B_pad - B)))

    out_t = pl.pallas_call(
        mlp_kernel,
        out_shape=jax.ShapeDtypeStruct((D, B_pad), jnp.float32),
        grid=(B_pad // TB,),
        in_specs=[
            pl.BlockSpec((FPAD, TB), lambda i: (0, i)),                # x tile
            pl.BlockSpec((N_LAYERS, FPAD, FPAD), lambda i: (0, 0, 0)),  # weights (resident)
            pl.BlockSpec((N_LAYERS, FPAD, 1), lambda i: (0, 0, 0)),     # biases  (resident)
        ],
        out_specs=pl.BlockSpec((D, TB), lambda i: (0, i)),
        compiler_params=pltpu.CompilerParams(
            dimension_semantics=("parallel",)),
    )(x_t, w_packed, b_packed)

    return out_t[:, :B].T


def make_params(input_dim, key):
    """Deterministic synthetic params matching the PyTorch module's layer sizes."""
    dims = [
        input_dim,
        int(0.75 * input_dim),
        int(0.50 * input_dim),
        int(0.33 * input_dim),
        int(0.25 * input_dim),
        int(0.33 * input_dim),
        int(0.50 * input_dim),
        int(0.75 * input_dim),
        input_dim,
    ]
    weights, biases = [], []
    for i in range(N_LAYERS):
        key, kw, kb = jax.random.split(key, 3)
        din, dout = dims[i], dims[i + 1]
        bound = 1.0 / (din ** 0.5)
        # PyTorch nn.Linear layout: weight (out, in), bias (out,)
        W = jax.random.uniform(kw, (dout, din), jnp.float32, -bound, bound)
        b = jax.random.uniform(kb, (dout,), jnp.float32, -bound, bound)
        weights.append(W)
        biases.append(b)
    return weights, biases


def reference_forward(x, weights, biases):
    h = x
    for i in range(N_LAYERS):
        h = jnp.dot(h, weights[i].T, precision=lax.Precision.HIGHEST) + biases[i]
        if i < N_LAYERS - 1:
            h = jnp.tanh(h)
    return h


if __name__ == "__main__":
    input_dim = 10
    key = jax.random.PRNGKey(0)
    key, kx1, kx2 = jax.random.split(key, 3)

    weights, biases = make_params(input_dim, key)
    w_packed, b_packed = pack_params(weights, biases)   # hoisted, done once

    # Case 1: tiny batch (single grid step, TB clamped to 128).
    x1 = jax.random.normal(kx1, (4, input_dim), jnp.float32)
    out1 = jax.block_until_ready(net_forward(x1, w_packed, b_packed))
    ref1 = reference_forward(x1, weights, biases)
    assert out1.shape == (4, input_dim)
    assert jnp.max(jnp.abs(out1 - ref1)) < 1e-4, "Pallas output mismatch (case 1)"

    # Case 2: exercise the multi-tile pipelined grid path (small TB on purpose).
    x2 = jax.random.normal(kx2, (300, input_dim), jnp.float32)
    out2 = jax.block_until_ready(net_forward(x2, w_packed, b_packed, tb_max=128))
    ref2 = reference_forward(x2, weights, biases)
    assert out2.shape == (300, input_dim)
    assert jnp.max(jnp.abs(out2 - ref2)) < 1e-4, "Pallas output mismatch (case 2)"

    print("KERNEL_OK")
</pallas_src>

<mosaic_0001>
module attributes {stable_mosaic.version = 11 : i64} {
  func.func @mlp_kernel(%arg0: i32, %arg1: memref<16x128xf32, #tpu.memory_space<vmem>>, %arg2: memref<8x16x16xf32, #tpu.memory_space<vmem>>, %arg3: memref<8x16x1xf32, #tpu.memory_space<vmem>>, %arg4: memref<10x128xf32, #tpu.memory_space<vmem>>) attributes {dimension_semantics = [#tpu.dimension_semantics<parallel>], iteration_bounds = array<i64: 1>, scalar_prefetch = 0 : i64, scratch_operands = 0 : i64, tpu.core_type = #tpu.core_type<tc>, window_params = [{transform_indices = @transform_0, window_bounds = array<i64: 16, 128>}, {pipeline_mode = #tpu.pipeline_mode<synchronous>, transform_indices = @transform_1, window_bounds = array<i64: 8, 16, 16>}, {pipeline_mode = #tpu.pipeline_mode<synchronous>, transform_indices = @transform_2, window_bounds = array<i64: 8, 16, 1>}, {transform_indices = @transform_3, window_bounds = array<i64: 10, 128>}]} {
    %c0 = arith.constant 0 : index
    %c0_0 = arith.constant 0 : index
    %0 = vector.load %arg1[%c0, %c0_0] : memref<16x128xf32, #tpu.memory_space<vmem>>, vector<16x128xf32>
    %c0_1 = arith.constant 0 : index
    %c0_2 = arith.constant 0 : index
    %c0_3 = arith.constant 0 : index
    %1 = vector.load %arg2[%c0_1, %c0_2, %c0_3] : memref<8x16x16xf32, #tpu.memory_space<vmem>>, vector<1x16x16xf32>
    %2 = vector.shape_cast %1 : vector<1x16x16xf32> to vector<16x16xf32>
    %c0_4 = arith.constant 0 : index
    %c0_5 = arith.constant 0 : index
    %c0_6 = arith.constant 0 : index
    %3 = vector.load %arg3[%c0_4, %c0_5, %c0_6] : memref<8x16x1xf32, #tpu.memory_space<vmem>>, vector<1x16x1xf32>
    %4 = vector.shape_cast %3 : vector<1x16x1xf32> to vector<16x1xf32>
    %cst = arith.constant dense<0.000000e+00> : vector<16x128xf32>
    %5 = tpu.matmul %2, %0, %cst {dimension_numbers = #tpu.dot_dimension_numbers<[1], [0], [0], [1], [0, 0, 1, 1], [], []>, precision = #tpu.contract_precision<fp32>} : vector<16x16xf32>, vector<16x128xf32>, vector<16x128xf32> -> vector<16x128xf32>
    %6 = vector.broadcast %4 : vector<16x1xf32> to vector<16x128xf32>
    %7 = arith.addf %5, %6 : vector<16x128xf32>
    %8 = math.tanh %7 : vector<16x128xf32>
    %c1 = arith.constant 1 : index
    %c0_7 = arith.constant 0 : index
    %c0_8 = arith.constant 0 : index
    %9 = vector.load %arg2[%c1, %c0_7, %c0_8] : memref<8x16x16xf32, #tpu.memory_space<vmem>>, vector<1x16x16xf32>
    %10 = vector.shape_cast %9 : vector<1x16x16xf32> to vector<16x16xf32>
    %c1_9 = arith.constant 1 : index
    %c0_10 = arith.constant 0 : index
    %c0_11 = arith.constant 0 : index
    %11 = vector.load %arg3[%c1_9, %c0_10, %c0_11] : memref<8x16x1xf32, #tpu.memory_space<vmem>>, vector<1x16x1xf32>
    %12 = vector.shape_cast %11 : vector<1x16x1xf32> to vector<16x1xf32>
    %cst_12 = arith.constant dense<0.000000e+00> : vector<16x128xf32>
    %13 = tpu.matmul %10, %8, %cst_12 {dimension_numbers = #tpu.dot_dimension_numbers<[1], [0], [0], [1], [0, 0, 1, 1], [], []>, precision = #tpu.contract_precision<fp32>} : vector<16x16xf32>, vector<16x128xf32>, vector<16x128xf32> -> vector<16x128xf32>
    %14 = vector.broadcast %12 : vector<16x1xf32> to vector<16x128xf32>
    %15 = arith.addf %13, %14 : vector<16x128xf32>
    %16 = math.tanh %15 : vector<16x128xf32>
    %c2 = arith.constant 2 : index
    %c0_13 = arith.constant 0 : index
    %c0_14 = arith.constant 0 : index
    %17 = vector.load %arg2[%c2, %c0_13, %c0_14] : memref<8x16x16xf32, #tpu.memory_space<vmem>>, vector<1x16x16xf32>
    %18 = vector.shape_cast %17 : vector<1x16x16xf32> to vector<16x16xf32>
    %c2_15 = arith.constant 2 : index
    %c0_16 = arith.constant 0 : index
    %c0_17 = arith.constant 0 : index
    %19 = vector.load %arg3[%c2_15, %c0_16, %c0_17] : memref<8x16x1xf32, #tpu.memory_space<vmem>>, vector<1x16x1xf32>
    %20 = vector.shape_cast %19 : vector<1x16x1xf32> to vector<16x1xf32>
    %cst_18 = arith.constant dense<0.000000e+00> : vector<16x128xf32>
    %21 = tpu.matmul %18, %16, %cst_18 {dimension_numbers = #tpu.dot_dimension_numbers<[1], [0], [0], [1], [0, 0, 1, 1], [], []>, precision = #tpu.contract_precision<fp32>} : vector<16x16xf32>, vector<16x128xf32>, vector<16x128xf32> -> vector<16x128xf32>
    %22 = vector.broadcast %20 : vector<16x1xf32> to vector<16x128xf32>
    %23 = arith.addf %21, %22 : vector<16x128xf32>
    %24 = math.tanh %23 : vector<16x128xf32>
    %c3 = arith.constant 3 : index
    %c0_19 = arith.constant 0 : index
    %c0_20 = arith.constant 0 : index
    %25 = vector.load %arg2[%c3, %c0_19, %c0_20] : memref<8x16x16xf32, #tpu.memory_space<vmem>>, vector<1x16x16xf32>
    %26 = vector.shape_cast %25 : vector<1x16x16xf32> to vector<16x16xf32>
    %c3_21 = arith.constant 3 : index
    %c0_22 = arith.constant 0 : index
    %c0_23 = arith.constant 0 : index
    %27 = vector.load %arg3[%c3_21, %c0_22, %c0_23] : memref<8x16x1xf32, #tpu.memory_space<vmem>>, vector<1x16x1xf32>
    %28 = vector.shape_cast %27 : vector<1x16x1xf32> to vector<16x1xf32>
    %cst_24 = arith.constant dense<0.000000e+00> : vector<16x128xf32>
    %29 = tpu.matmul %26, %24, %cst_24 {dimension_numbers = #tpu.dot_dimension_numbers<[1], [0], [0], [1], [0, 0, 1, 1], [], []>, precision = #tpu.contract_precision<fp32>} : vector<16x16xf32>, vector<16x128xf32>, vector<16x128xf32> -> vector<16x128xf32>
    %30 = vector.broadcast %28 : vector<16x1xf32> to vector<16x128xf32>
    %31 = arith.addf %29, %30 : vector<16x128xf32>
    %32 = math.tanh %31 : vector<16x128xf32>
    %c4 = arith.constant 4 : index
    %c0_25 = arith.constant 0 : index
    %c0_26 = arith.constant 0 : index
    %33 = vector.load %arg2[%c4, %c0_25, %c0_26] : memref<8x16x16xf32, #tpu.memory_space<vmem>>, vector<1x16x16xf32>
    %34 = vector.shape_cast %33 : vector<1x16x16xf32> to vector<16x16xf32>
    %c4_27 = arith.constant 4 : index
    %c0_28 = arith.constant 0 : index
    %c0_29 = arith.constant 0 : index
    %35 = vector.load %arg3[%c4_27, %c0_28, %c0_29] : memref<8x16x1xf32, #tpu.memory_space<vmem>>, vector<1x16x1xf32>
    %36 = vector.shape_cast %35 : vector<1x16x1xf32> to vector<16x1xf32>
    %cst_30 = arith.constant dense<0.000000e+00> : vector<16x128xf32>
    %37 = tpu.matmul %34, %32, %cst_30 {dimension_numbers = #tpu.dot_dimension_numbers<[1], [0], [0], [1], [0, 0, 1, 1], [], []>, precision = #tpu.contract_precision<fp32>} : vector<16x16xf32>, vector<16x128xf32>, vector<16x128xf32> -> vector<16x128xf32>
    %38 = vector.broadcast %36 : vector<16x1xf32> to vector<16x128xf32>
    %39 = arith.addf %37, %38 : vector<16x128xf32>
    %40 = math.tanh %39 : vector<16x128xf32>
    %c5 = arith.constant 5 : index
    %c0_31 = arith.constant 0 : index
    %c0_32 = arith.constant 0 : index
    %41 = vector.load %arg2[%c5, %c0_31, %c0_32] : memref<8x16x16xf32, #tpu.memory_space<vmem>>, vector<1x16x16xf32>
    %42 = vector.shape_cast %41 : vector<1x16x16xf32> to vector<16x16xf32>
    %c5_33 = arith.constant 5 : index
    %c0_34 = arith.constant 0 : index
    %c0_35 = arith.constant 0 : index
    %43 = vector.load %arg3[%c5_33, %c0_34, %c0_35] : memref<8x16x1xf32, #tpu.memory_space<vmem>>, vector<1x16x1xf32>
    %44 = vector.shape_cast %43 : vector<1x16x1xf32> to vector<16x1xf32>
    %cst_36 = arith.constant dense<0.000000e+00> : vector<16x128xf32>
    %45 = tpu.matmul %42, %40, %cst_36 {dimension_numbers = #tpu.dot_dimension_numbers<[1], [0], [0], [1], [0, 0, 1, 1], [], []>, precision = #tpu.contract_precision<fp32>} : vector<16x16xf32>, vector<16x128xf32>, vector<16x128xf32> -> vector<16x128xf32>
    %46 = vector.broadcast %44 : vector<16x1xf32> to vector<16x128xf32>
    %47 = arith.addf %45, %46 : vector<16x128xf32>
    %48 = math.tanh %47 : vector<16x128xf32>
    %c6 = arith.constant 6 : index
    %c0_37 = arith.constant 0 : index
    %c0_38 = arith.constant 0 : index
    %49 = vector.load %arg2[%c6, %c0_37, %c0_38] : memref<8x16x16xf32, #tpu.memory_space<vmem>>, vector<1x16x16xf32>
    %50 = vector.shape_cast %49 : vector<1x16x16xf32> to vector<16x16xf32>
    %c6_39 = arith.constant 6 : index
    %c0_40 = arith.constant 0 : index
    %c0_41 = arith.constant 0 : index
    %51 = vector.load %arg3[%c6_39, %c0_40, %c0_41] : memref<8x16x1xf32, #tpu.memory_space<vmem>>, vector<1x16x1xf32>
    %52 = vector.shape_cast %51 : vector<1x16x1xf32> to vector<16x1xf32>
    %cst_42 = arith.constant dense<0.000000e+00> : vector<16x128xf32>
    %53 = tpu.matmul %50, %48, %cst_42 {dimension_numbers = #tpu.dot_dimension_numbers<[1], [0], [0], [1], [0, 0, 1, 1], [], []>, precision = #tpu.contract_precision<fp32>} : vector<16x16xf32>, vector<16x128xf32>, vector<16x128xf32> -> vector<16x128xf32>
    %54 = vector.broadcast %52 : vector<16x1xf32> to vector<16x128xf32>
    %55 = arith.addf %53, %54 : vector<16x128xf32>
    %56 = math.tanh %55 : vector<16x128xf32>
    %c7 = arith.constant 7 : index
    %c0_43 = arith.constant 0 : index
    %c0_44 = arith.constant 0 : index
    %57 = vector.load %arg2[%c7, %c0_43, %c0_44] : memref<8x16x16xf32, #tpu.memory_space<vmem>>, vector<1x16x16xf32>
    %58 = vector.shape_cast %57 : vector<1x16x16xf32> to vector<16x16xf32>
    %c7_45 = arith.constant 7 : index
    %c0_46 = arith.constant 0 : index
    %c0_47 = arith.constant 0 : index
    %59 = vector.load %arg3[%c7_45, %c0_46, %c0_47] : memref<8x16x1xf32, #tpu.memory_space<vmem>>, vector<1x16x1xf32>
    %60 = vector.shape_cast %59 : vector<1x16x1xf32> to vector<16x1xf32>
    %cst_48 = arith.constant dense<0.000000e+00> : vector<16x128xf32>
    %61 = tpu.matmul %58, %56, %cst_48 {dimension_numbers = #tpu.dot_dimension_numbers<[1], [0], [0], [1], [0, 0, 1, 1], [], []>, precision = #tpu.contract_precision<fp32>} : vector<16x16xf32>, vector<16x128xf32>, vector<16x128xf32> -> vector<16x128xf32>
    %62 = vector.broadcast %60 : vector<16x1xf32> to vector<16x128xf32>
    %63 = arith.addf %61, %62 : vector<16x128xf32>
    %64 = vector.extract_strided_slice %63 {offsets = [0, 0], sizes = [10, 128], strides = [1, 1]} : vector<16x128xf32> to vector<10x128xf32>
    %c0_49 = arith.constant 0 : index
    %c0_50 = arith.constant 0 : index
    %65 = vector.load %arg4[%c0_49, %c0_50] : memref<10x128xf32, #tpu.memory_space<vmem>>, vector<10x128xf32>
    tpu.vector_store %arg4[%c0_49, %c0_50], %64 {strides = array<i32>} : memref<10x128xf32, #tpu.memory_space<vmem>>, vector<10x128xf32>,
    return
  }
  func.func @transform_0(%arg0: i32) -> (i32, i32) {
    %c0_i32 = arith.constant 0 : i32
    %c0_i32_0 = arith.constant 0 : i32
    return %c0_i32, %arg0 : i32, i32
  }
  func.func @transform_1(%arg0: i32) -> (i32, i32, i32) {
    %c0_i32 = arith.constant 0 : i32
    %c0_i32_0 = arith.constant 0 : i32
    %c0_i32_1 = arith.constant 0 : i32
    %c0_i32_2 = arith.constant 0 : i32
    return %c0_i32, %c0_i32_0, %c0_i32_1 : i32, i32, i32
  }
  func.func @transform_2(%arg0: i32) -> (i32, i32, i32) {
    %c0_i32 = arith.constant 0 : i32
    %c0_i32_0 = arith.constant 0 : i32
    %c0_i32_1 = arith.constant 0 : i32
    %c0_i32_2 = arith.constant 0 : i32
    return %c0_i32, %c0_i32_0, %c0_i32_1 : i32, i32, i32
  }
  func.func @transform_3(%arg0: i32) -> (i32, i32) {
    %c0_i32 = arith.constant 0 : i32
    %c0_i32_0 = arith.constant 0 : i32
    return %c0_i32, %arg0 : i32, i32
  }
}

</mosaic_0001>

<bundles_post_ra>
// kernel: tpu_custom_call.1
= control target key start
LH: loop header
LB: loop body
LE: loop exit
PB: predicated region body
PF: predicated region fallthrough
CT: control target
= control target key end

     0   :  { %8 = vsyncpa [#allocation3], 0  ;;  %s5144_s0 = inlined_call_operand.hbm [shape: f32[16,128], index: 0, kind: input, shape index: {}]   ;;  %s5145_s1 = inlined_call_operand.vmem [shape: f32[8,16,16], index: 1, kind: input, shape index: {}]   ;;  %s5146_s2 = inlined_call_operand.vmem [shape: f32[8,16,1], index: 2, kind: input, shape index: {}]   ;;  %s5147_s3 = inlined_call_operand.hbm [shape: f32[10,128], index: 3, kind: output, shape index: {}]  }
   0x1   :  { %9 = vsyncpa [#allocation4], 0  ;;  %s4890_s12 = smov [#allocation2]  }
   0x2   :  { %s15_s13 = sshll.u32 %s4890_s12, 4  ;;  %s16_s13 = int_to_ptr.vmem [resolvable:$true] %s15_s13 }
   0x3   :  { %s4854_s14 = scalar_lea.vmem %s16_s13, 256  ;;  %p4859_p1 = scmp.lt.s32.totalorder %s16_s13, %s16_s13 }
   0x4   :  { %p4855_p0 = scmp.ne.s32.totalorder %s16_s13, %s4854_s14  ;;  %p4860_p2 = scmp.lt.s32.totalorder %s4854_s14, %s4854_s14 }
   0x6   :  { %p4861_p3 = por %p4860_p2, %p4859_p1 }
   0x8   :  { %p4862_p4 = pnand %p4861_p3, %p4855_p0 }
   0xa   :  { %4865 = shalt.err (!%p4862_p4)
}
   0xb   :  { %s4891_s15 = smov 128   ;;  %s4892_s16 = smov 8  }
   0xc   :  { %21 = dma.hbm_to_vmem [thread:$0]  %s5144_s0, 256, %s16_s13, [#allocation3], %s4891_s15, %s4891_s15, %s4892_s16  }
   0xd   :  { %4886 = dma.done.wait [#allocation3], 256  }
   0xe   :  { %4887 = vsyncadd [#allocation3], 4294967040  ;;  %v4893_v0 = vmov 0   ;;  %vm45_vm0 = vcmask 130048   ;;  %v30_v1 = vld [vmem:[#allocation2 + $0x8] sm:$0xff]  ;;  %v29_v2 = vld [vmem:[#allocation2] sm:$0xff] }
   0xf   :  { %4816 = vset.pattern.permute.xlu0 %v4893_v0  ;;  %4817 = vset.pattern.permute.xlu1 %v4893_v0  ;;  %v31_v3 = vld [vmem:[%s5145_s1] sm:$0xff]  ;;  %v81_v4 = vand.u32 4294901760, %v30_v1  ;;  %v84_v5 = vand.u32 4294901760, %v29_v2  ;;  %v32_v7 = vld [vmem:[%s5145_s1 + $0x8] sm:$0xff]  ;;  %v4266_v30 = vld [vmem:[%s5146_s2 + $0x38] sm:$0xff] }
  0x10   :  { %v47_v6 = vsel %vm45_vm0, %v31_v3, 0  ;;  %v34_v8 = vld [vmem:[%s5146_s2 + $0x8] sm:$0xff]  ;;  %v50_v10 = vsel %vm45_vm0, %v32_v7, 0  ;;  %v33_v14 = vld [vmem:[%s5146_s2] sm:$0xff]  ;;  %v4274_v32 = vld [vmem:[%s5146_s2 + $0x58] sm:$0xff] }
  0x11   :  { %v119_v9 = vand.u32 4294901760, %v47_v6  ;;  %42 = vperm.xlu0 %4816, %v34_v8   ;;  %4475 = vmatprep.subr.mxu0 %v81_v4  ;;  %v169_v11 = vsub.f32 %v30_v1, %v81_v4  ;;  %v129_v12 = vand.u32 4294901760, %v50_v10  ;;  %v176_v13 = vsub.f32 %v29_v2, %v84_v5  ;;  %v4262_v23 = vld [vmem:[%s5146_s2 + $0x28] sm:$0xff]  ;;  %v4281_v34 = vld [vmem:[%s5146_s2 + $0x70] sm:$0xff]  ;;  %v4258_v42 = vld [vmem:[%s5146_s2 + $0x18] sm:$0xff] }
  0x12   :  { %4476 = vmatpush3.msra.mxu0 %v81_v4  ;;  %v4270_v31 = vld [vmem:[%s5146_s2 + $0x48] sm:$0xff]  ;;  %v4255_v35 = vld [vmem:[%s5145_s1 + $0x10] sm:$0xff]  ;;  %569 = vperm.xlu1 %4817, %v4258_v42   ;;  %v4261_v44 = vld [vmem:[%s5146_s2 + $0x20] sm:$0xff] }
  0x13   :  { %v120_v15 = vsub.f32 %v47_v6, %v119_v9  ;;  %4486 = vmatprep.mubr.f32.mxu1 %v119_v9  ;;  %4477 = vmatprep.subr.mxu0 %v84_v5  ;;  %v170_v16 = vand.u32 4294901760, %v169_v11  ;;  %v130_v17 = vsub.f32 %v50_v10, %v129_v12  ;;  %v177_v18 = vand.u32 4294901760, %v176_v13  ;;  %v4278_v33 = vld [vmem:[%s5146_s2 + $0x68] sm:$0xff]  ;;  %v4257_v43 = vld [vmem:[%s5146_s2 + $0x10] sm:$0xff]  ;;  %v4269_v46 = vld [vmem:[%s5146_s2 + $0x40] sm:$0xff] }
  0x14   :  { %4478 = vmatpush3.msra.mxu0 %v84_v5  ;;  %v573_v36 = vsel %vm45_vm0, %v4255_v35, 0  ;;  %v4265_v45 = vld [vmem:[%s5146_s2 + $0x30] sm:$0xff]  ;;  %v4277_v48 = vld [vmem:[%s5146_s2 + $0x60] sm:$0xff]  ;;  %v4282_v49 = vld [vmem:[%s5146_s2 + $0x78] sm:$0xff] }
  0x15   :  { %v121_v19 = vand.u32 4294901760, %v120_v15  ;;  %37 = vperm.xlu0 %4816, %v33_v14   ;;  %v171_v20 = vsub.f32 %v169_v11, %v170_v16  ;;  %v131_v21 = vand.u32 4294901760, %v130_v17  ;;  %v178_v22 = vsub.f32 %v176_v13, %v177_v18  ;;  %4489 = vmatprep.subr.mxu0 %v169_v11  ;;  %v4273_v47 = vld [vmem:[%s5146_s2 + $0x50] sm:$0xff]  ;;  %v4256_v3 = vld [vmem:[%s5145_s1 + $0x18] sm:$0xff] }
  0x16   :  { %v4957_v37 = vand.u32 4294901760, %v573_v36  ;;  %564 = vperm.xlu1 %4817, %v4257_v43  }
  0x17   :  { %v122_v24 = vsub.f32 %v120_v15, %v121_v19  ;;  %v172_v25 = vand.u32 4294901760, %v171_v20  ;;  %v132_v26 = vsub.f32 %v130_v17, %v131_v21  ;;  %v179_v27 = vand.u32 4294901760, %v178_v22 }
  0x18   :  { %v4960_v38 = vsub.f32 %v573_v36, %v4957_v37 }
  0x19   :  { %v123_v28 = vand.u32 4294901760, %v122_v24  ;;  %1095 = vperm.xlu0 %4816, %v4262_v23   ;;  %4482 = vmatprep.subr.mxu1 %v172_v25  ;;  %v133_v29 = vand.u32 4294901760, %v132_v26 }
  0x1a   :  { %4483 = vmatpush3.msra.mxu1 %v172_v25  ;;  %v647_v39 = vand.u32 4294901760, %v4960_v38  ;;  %1090 = vperm.xlu1 %4817, %v4261_v44  }
  0x1b   :  { %4479 = vmatprep.mubr.f32.mxu0 %v123_v28  ;;  %4484 = vmatprep.subr.mxu1 %v179_v27 }
  0x1c   :  { %4480 = vmatmul.mubr.f32.vlgmr.msra.gmra.mxu0 %v133_v29  ;;  %4485 = vmatpush3.msra.mxu1 %v179_v27  ;;  %v648_v40 = vsub.f32 %v4960_v38, %v647_v39 }
  0x1d   :  { %4490 = vmatpush3.msra.mxu0 %v169_v11  ;;  %4487 = vmatmul.mubr.f32.vlgmr.msra.gmra.mxu1 %v129_v12 }
  0x1e   :  { %4491 = vmatprep.subr.mxu0 %v176_v13  ;;  %4496 = vmatprep.subr.mxu1 %v81_v4  ;;  %v649_v41 = vand.u32 4294901760, %v648_v40 }
  0x1f   :  { %4492 = vmatpush3.msra.mxu0 %v176_v13  ;;  %4493 = vmatprep.mubr.f32.mxu0 %v120_v15 }
  0x20   :  { %4497 = vmatpush3.msra.mxu1 %v81_v4  ;;  %4494 = vmatmul.mubr.f32.vlgmr.msra.gmra.mxu0 %v130_v17 }
  0x21   :  { %4498 = vmatprep.subr.mxu1 %v84_v5  ;;  %4503 = vmatprep.subr.mxu0 %v170_v16 }
  0x22   :  { %4499 = vmatpush3.msra.mxu1 %v84_v5  ;;  %4500 = vmatprep.mubr.f32.mxu1 %v121_v19 }
  0x23   :  { %4504 = vmatpush3.msra.mxu0 %v170_v16  ;;  %4501 = vmatmul.mubr.f32.vlgmr.msra.gmra.mxu1 %v131_v21 }
  0x24   :  { %4505 = vmatprep.subr.mxu0 %v177_v18  ;;  %4510 = vmatprep.subr.mxu1 %v81_v4 }
  0x25   :  { %4506 = vmatpush3.msra.mxu0 %v177_v18  ;;  %4507 = vmatprep.mubr.f32.mxu0 %v119_v9 }
  0x26   :  { %4511 = vmatpush3.msra.mxu1 %v81_v4  ;;  %4508 = vmatmul.mubr.f32.vlgmr.msra.gmra.mxu0 %v129_v12 }
  0x27   :  { %4512 = vmatprep.subr.mxu1 %v84_v5  ;;  %4514 = vmatprep.mubr.f32.mxu1 %v119_v9  ;;  %v576_v9 = vsel %vm45_vm0, %v4256_v3, 0 }
  0x28   :  { %4513 = vmatpush3.msra.mxu1 %v84_v5  ;;  %1621 = vperm.xlu0 %4816, %v4266_v30   ;;  %v655_v14 = vand.u32 4294901760, %v576_v9 }
  0x29   :  { %4515 = vmatmul.mubr.f32.vlgmr.msra.gmra.mxu1 %v129_v12  ;;  %4521 = vmatprep.mubr.f32.mxu0 %v649_v41 }
  0x2a   :  { %4528 = vmatprep.mubr.f32.mxu1 %v4957_v37  ;;  %1616 = vperm.xlu1 %4817, %v4265_v45   ;;  %v656_v15 = vsub.f32 %v576_v9, %v655_v14 }
  0x2c   :  { %2147 = vperm.xlu0 %4816, %v4270_v31   ;;  %v657_v16 = vand.u32 4294901760, %v656_v15  ;;  %v4259_v31 = vld [vmem:[%s5145_s1 + $0x20] sm:$0xff] }
  0x2e   :  { %2142 = vperm.xlu1 %4817, %v4269_v46   ;;  %v658_v17 = vsub.f32 %v656_v15, %v657_v16 }
  0x30   :  { %2673 = vperm.xlu0 %4816, %v4274_v32   ;;  %v659_v23 = vand.u32 4294901760, %v658_v17  ;;  %v1099_v32 = vsel %vm45_vm0, %v4259_v31, 0 }
  0x32   :  { %2668 = vperm.xlu1 %4817, %v4273_v47  }
  0x34   :  { %3199 = vperm.xlu0 %4816, %v4278_v33   ;;  %v5004_v33 = vand.u32 4294901760, %v1099_v32 }
  0x36   :  { %3194 = vperm.xlu1 %4817, %v4277_v48  }
  0x38   :  { %3720 = vperm.xlu0 %4816, %v4281_v34   ;;  %v5007_v34 = vsub.f32 %v1099_v32, %v5004_v33 }
  0x3a   :  { %3725 = vperm.xlu1 %4817, %v4282_v49   ;;  %v1173_v35 = vand.u32 4294901760, %v5007_v34 }
  0x3c   :  { %v1174_v36 = vsub.f32 %v5007_v34, %v1173_v35 }
  0x8c   :  { %v43_v50 = vpop.permute.xlu0 %42 }
  0x90   :  { %v38_v52 = vpop.permute.xlu0 %37 }
  0xdc   :  { %v4481_v51 = vpop.f32.mrf.mxu0 }
  0xdd   :  { %v136_v53 = vadd.f32 %v4481_v51, %v43_v50  ;;  %v4488_v55 = vpop.f32.mrf.mxu1 }
  0xde   :  { %v125_v54 = vpop.f32.mrf.mxu0 }
  0xdf   :  { %v126_v56 = vadd.f32 %v125_v54, %v38_v52  ;;  %v223_v57 = vadd.f32 %v4488_v55, %v136_v53  ;;  %v216_v58 = vpop.f32.mrf.mxu1  ;;  %v4260_v55 = vld [vmem:[%s5145_s1 + $0x28] sm:$0xff] }
  0xe0   :  { %v4495_v60 = vpop.f32.mrf.mxu0 }
  0xe1   :  { %v217_v59 = vadd.f32 %v216_v58, %v126_v56  ;;  %v306_v61 = vadd.f32 %v4495_v60, %v223_v57 }
  0xe2   :  { %v298_v62 = vpop.f32.mrf.mxu0 }
  0xe3   :  { %v299_v63 = vadd.f32 %v298_v62, %v217_v59  ;;  %v4502_v0 = vpop.f32.mrf.mxu1 }
  0xe4   :  { %v389_v1 = vadd.f32 %v4502_v0, %v306_v61  ;;  %v1102_v61 = vsel %vm45_vm0, %v4260_v55, 0 }
  0xe5   :  { %v380_v2 = vpop.f32.mrf.mxu1 }
  0xe6   :  { %v381_v4 = vadd.f32 %v380_v2, %v299_v63  ;;  %v4509_v5 = vpop.f32.mrf.mxu0  ;;  %v1181_v2 = vand.u32 4294901760, %v1102_v61 }
  0xe7   :  { %v472_v6 = vadd.f32 %v4509_v5, %v389_v1 }
  0xe8   :  { %v465_v7 = vpop.f32.mrf.mxu0  ;;  %v1182_v3 = vsub.f32 %v1102_v61, %v1181_v2 }
  0xe9   :  { %v4516_v8 = vpop.f32.mrf.mxu1  ;;  %v466_v10 = vadd.f32 %v465_v7, %v381_v4 }
  0xea   :  { %v551_v11 = vadd.f32 %v4516_v8, %v472_v6  ;;  %v1183_v4 = vand.u32 4294901760, %v1182_v3 }
  0xeb   :  { %v544_v12 = vpop.f32.mrf.mxu1 }
  0xec   :  { %4818 = vtanh.f32 %v551_v11  ;;  %v545_v13 = vadd.f32 %v544_v12, %v466_v10  ;;  %v1184_v5 = vsub.f32 %v1182_v3, %v1183_v4 }
  0xee   :  { %4820 = vtanh.f32 %v545_v13  ;;  %v1185_v10 = vand.u32 4294901760, %v1184_v5 }
  0xf9   :  { %v4819_v18 = vpop.eup %4818 }
  0xfa   :  { %v607_v19 = vand.u32 4294901760, %v4819_v18 }
  0xfb   :  { %v4821_v20 = vpop.eup %4820 }
  0xfc   :  { %v610_v21 = vand.u32 4294901760, %v4821_v20  ;;  %4517 = vmatprep.subr.mxu0 %v607_v19  ;;  %v695_v22 = vsub.f32 %v4819_v18, %v607_v19 }
  0xfd   :  { %4518 = vmatpush3.msra.mxu0 %v607_v19 }
  0xfe   :  { %4519 = vmatprep.subr.mxu0 %v610_v21  ;;  %v702_v24 = vsub.f32 %v4821_v20, %v610_v21  ;;  %v696_v25 = vand.u32 4294901760, %v695_v22 }
  0xff   :  { %4520 = vmatpush3.msra.mxu0 %v610_v21 }
 0x100   :  { %4531 = vmatprep.subr.mxu0 %v695_v22  ;;  %4522 = vmatmul.mubr.f32.vlgmr.msra.gmra.mxu0 %v659_v23  ;;  %v697_v26 = vsub.f32 %v695_v22, %v696_v25  ;;  %v703_v27 = vand.u32 4294901760, %v702_v24 }
 0x101   :  { %4532 = vmatpush3.msra.mxu0 %v695_v22  ;;  %4535 = vmatprep.mubr.f32.mxu0 %v4960_v38 }
 0x102   :  { %4533 = vmatprep.subr.mxu0 %v702_v24  ;;  %v698_v28 = vand.u32 4294901760, %v697_v26  ;;  %v704_v29 = vsub.f32 %v702_v24, %v703_v27 }
 0x103   :  { %4534 = vmatpush3.msra.mxu0 %v702_v24 }
 0x104   :  { %4524 = vmatprep.subr.mxu1 %v698_v28  ;;  %4545 = vmatprep.subr.mxu0 %v696_v25  ;;  %v705_v30 = vand.u32 4294901760, %v704_v29  ;;  %v1096_v29 = vpop.permute.xlu0 %1095 }
 0x105   :  { %4525 = vmatpush3.msra.mxu1 %v698_v28  ;;  %4536 = vmatmul.mubr.f32.vlgmr.msra.gmra.mxu0 %v656_v15 }
 0x106   :  { %4546 = vmatpush3.msra.mxu0 %v696_v25  ;;  %4526 = vmatprep.subr.mxu1 %v705_v30 }
 0x107   :  { %4547 = vmatprep.subr.mxu0 %v703_v27  ;;  %4527 = vmatpush3.msra.mxu1 %v705_v30 }
 0x108   :  { %4548 = vmatpush3.msra.mxu0 %v703_v27  ;;  %4529 = vmatmul.mubr.f32.vlgmr.msra.gmra.mxu1 %v655_v14 }
 0x109   :  { %4538 = vmatprep.subr.mxu1 %v607_v19  ;;  %4542 = vmatprep.mubr.f32.mxu1 %v647_v39  ;;  %v570_v39 = vpop.permute.xlu1 %569 }
 0x10a   :  { %4539 = vmatpush3.msra.mxu1 %v607_v19  ;;  %4549 = vmatprep.mubr.f32.mxu0 %v4957_v37 }
 0x10b   :  { %4540 = vmatprep.subr.mxu1 %v610_v21  ;;  %4550 = vmatmul.mubr.f32.vlgmr.msra.gmra.mxu0 %v655_v14 }
 0x10c   :  { %4541 = vmatpush3.msra.mxu1 %v610_v21 }
 0x10d   :  { %4543 = vmatmul.mubr.f32.vlgmr.msra.gmra.mxu1 %v657_v16  ;;  %4552 = vmatprep.subr.mxu1 %v607_v19  ;;  %v565_v43 = vpop.permute.xlu1 %564 }
 0x10e   :  { %4553 = vmatpush3.msra.mxu1 %v607_v19  ;;  %4556 = vmatprep.mubr.f32.mxu1 %v4957_v37  ;;  %v1175_v37 = vand.u32 4294901760, %v1174_v36  ;;  %v4263_v19 = vld [vmem:[%s5145_s1 + $0x30] sm:$0xff] }
 0x10f   :  { %4554 = vmatprep.subr.mxu1 %v610_v21  ;;  %v1625_v20 = vsel %vm45_vm0, %v4263_v19, 0 }
 0x110   :  { %4555 = vmatpush3.msra.mxu1 %v610_v21  ;;  %4563 = vmatprep.mubr.f32.mxu0 %v1175_v37  ;;  %v5027_v21 = vand.u32 4294901760, %v1625_v20 }
 0x111   :  { %4557 = vmatmul.mubr.f32.vlgmr.msra.gmra.mxu1 %v655_v14  ;;  %v1091_v31 = vpop.permute.xlu1 %1090 }
 0x112   :  { %4570 = vmatprep.mubr.f32.mxu1 %v5004_v33  ;;  %v5030_v22 = vsub.f32 %v1625_v20, %v5027_v21 }
 0x114   :  { %v1699_v23 = vand.u32 4294901760, %v5030_v22 }
 0x115   :  { %v1617_v19 = vpop.permute.xlu1 %1616 }
 0x116   :  { %v1700_v24 = vsub.f32 %v5030_v22, %v1699_v23 }
 0x118   :  { %v1701_v25 = vand.u32 4294901760, %v1700_v24 }
 0x1c0   :  { %v4523_v38 = vpop.f32.mrf.mxu0 }
 0x1c1   :  { %v662_v42 = vadd.f32 %v4523_v38, %v570_v39 }
 0x1c2   :  { %v651_v40 = vpop.f32.mrf.mxu0 }
 0x1c3   :  { %v652_v45 = vadd.f32 %v651_v40, %v565_v43  ;;  %v4264_v43 = vld [vmem:[%s5145_s1 + $0x38] sm:$0xff] }
 0x1c5   :  { %v4537_v41 = vpop.f32.mrf.mxu0 }
 0x1c7   :  { %v824_v47 = vpop.f32.mrf.mxu0 }
 0x1c8   :  { %v4530_v44 = vpop.f32.mrf.mxu1 }
 0x1c9   :  { %v749_v46 = vadd.f32 %v4530_v44, %v662_v42 }
 0x1ca   :  { %v742_v48 = vpop.f32.mrf.mxu1 }
 0x1cb   :  { %v832_v49 = vadd.f32 %v4537_v41, %v749_v46  ;;  %v743_v50 = vadd.f32 %v742_v48, %v652_v45  ;;  %v4551_v53 = vpop.f32.mrf.mxu0 }
 0x1cd   :  { %v825_v51 = vadd.f32 %v824_v47, %v743_v50  ;;  %v4544_v52 = vpop.f32.mrf.mxu1  ;;  %v991_v59 = vpop.f32.mrf.mxu0 }
 0x1ce   :  { %v915_v54 = vadd.f32 %v4544_v52, %v832_v49  ;;  %v1628_v49 = vsel %vm45_vm0, %v4264_v43, 0 }
 0x1cf   :  { %v906_v56 = vpop.f32.mrf.mxu1 }
 0x1d0   :  { %v998_v57 = vadd.f32 %v4551_v53, %v915_v54  ;;  %v907_v58 = vadd.f32 %v906_v56, %v825_v51  ;;  %v1707_v54 = vand.u32 4294901760, %v1628_v49 }
 0x1d1   :  { %v4558_v60 = vpop.f32.mrf.mxu1 }
 0x1d2   :  { %v992_v62 = vadd.f32 %v991_v59, %v907_v58  ;;  %v1077_v63 = vadd.f32 %v4558_v60, %v998_v57  ;;  %v1708_v55 = vsub.f32 %v1628_v49, %v1707_v54 }
 0x1d3   :  { %v1070_v0 = vpop.f32.mrf.mxu1 }
 0x1d4   :  { %4822 = vtanh.f32 %v1077_v63  ;;  %v1071_v1 = vadd.f32 %v1070_v0, %v992_v62  ;;  %v1709_v56 = vand.u32 4294901760, %v1708_v55 }
 0x1d6   :  { %4824 = vtanh.f32 %v1071_v1  ;;  %v1710_v57 = vsub.f32 %v1708_v55, %v1709_v56 }
 0x1d8   :  { %v1711_v62 = vand.u32 4294901760, %v1710_v57 }
 0x1e1   :  { %v4823_v6 = vpop.eup %4822 }
 0x1e2   :  { %v1133_v7 = vand.u32 4294901760, %v4823_v6 }
 0x1e3   :  { %v4825_v8 = vpop.eup %4824 }
 0x1e4   :  { %v1136_v9 = vand.u32 4294901760, %v4825_v8  ;;  %4559 = vmatprep.subr.mxu0 %v1133_v7  ;;  %v1221_v11 = vsub.f32 %v4823_v6, %v1133_v7 }
 0x1e5   :  { %4560 = vmatpush3.msra.mxu0 %v1133_v7 }
 0x1e6   :  { %4561 = vmatprep.subr.mxu0 %v1136_v9  ;;  %v1228_v12 = vsub.f32 %v4825_v8, %v1136_v9  ;;  %v1222_v13 = vand.u32 4294901760, %v1221_v11 }
 0x1e7   :  { %4562 = vmatpush3.msra.mxu0 %v1136_v9 }
 0x1e8   :  { %4564 = vmatmul.mubr.f32.vlgmr.msra.gmra.mxu0 %v1185_v10  ;;  %4573 = vmatprep.subr.mxu0 %v1221_v11  ;;  %v1223_v14 = vsub.f32 %v1221_v11, %v1222_v13  ;;  %v1229_v15 = vand.u32 4294901760, %v1228_v12 }
 0x1e9   :  { %4574 = vmatpush3.msra.mxu0 %v1221_v11  ;;  %4577 = vmatprep.mubr.f32.mxu0 %v5007_v34 }
 0x1ea   :  { %4575 = vmatprep.subr.mxu0 %v1228_v12  ;;  %v1224_v16 = vand.u32 4294901760, %v1223_v14  ;;  %v1230_v17 = vsub.f32 %v1228_v12, %v1229_v15 }
 0x1eb   :  { %4576 = vmatpush3.msra.mxu0 %v1228_v12 }
 0x1ec   :  { %4566 = vmatprep.subr.mxu1 %v1224_v16  ;;  %4587 = vmatprep.subr.mxu0 %v1222_v13  ;;  %v1231_v18 = vand.u32 4294901760, %v1230_v17  ;;  %v1622_v17 = vpop.permute.xlu0 %1621 }
 0x1ed   :  { %4567 = vmatpush3.msra.mxu1 %v1224_v16  ;;  %4578 = vmatmul.mubr.f32.vlgmr.msra.gmra.mxu0 %v1182_v3 }
 0x1ee   :  { %4588 = vmatpush3.msra.mxu0 %v1222_v13  ;;  %4568 = vmatprep.subr.mxu1 %v1231_v18 }
 0x1ef   :  { %4589 = vmatprep.subr.mxu0 %v1229_v15  ;;  %4569 = vmatpush3.msra.mxu1 %v1231_v18 }
 0x1f0   :  { %4590 = vmatpush3.msra.mxu0 %v1229_v15  ;;  %4571 = vmatmul.mubr.f32.vlgmr.msra.gmra.mxu1 %v1181_v2 }
 0x1f1   :  { %4580 = vmatprep.subr.mxu1 %v1133_v7  ;;  %4584 = vmatprep.mubr.f32.mxu1 %v1173_v35 }
 0x1f2   :  { %4581 = vmatpush3.msra.mxu1 %v1133_v7  ;;  %4591 = vmatprep.mubr.f32.mxu0 %v5004_v33 }
 0x1f3   :  { %4582 = vmatprep.subr.mxu1 %v1136_v9  ;;  %4592 = vmatmul.mubr.f32.vlgmr.msra.gmra.mxu0 %v1181_v2 }
 0x1f4   :  { %4583 = vmatpush3.msra.mxu1 %v1136_v9  ;;  %4605 = vmatprep.mubr.f32.mxu0 %v1701_v25 }
 0x1f5   :  { %4585 = vmatmul.mubr.f32.vlgmr.msra.gmra.mxu1 %v1183_v4  ;;  %4594 = vmatprep.subr.mxu1 %v1133_v7 }
 0x1f6   :  { %4595 = vmatpush3.msra.mxu1 %v1133_v7  ;;  %4598 = vmatprep.mubr.f32.mxu1 %v5004_v33  ;;  %v4267_v7 = vld [vmem:[%s5145_s1 + $0x40] sm:$0xff] }
 0x1f7   :  { %4596 = vmatprep.subr.mxu1 %v1136_v9  ;;  %v2151_v8 = vsel %vm45_vm0, %v4267_v7, 0  ;;  %v2143_v7 = vpop.permute.xlu1 %2142 }
 0x1f8   :  { %4597 = vmatpush3.msra.mxu1 %v1136_v9  ;;  %v5050_v9 = vand.u32 4294901760, %v2151_v8 }
 0x1f9   :  { %4599 = vmatmul.mubr.f32.vlgmr.msra.gmra.mxu1 %v1181_v2 }
 0x1fa   :  { %4612 = vmatprep.mubr.f32.mxu1 %v5027_v21  ;;  %v5053_v10 = vsub.f32 %v2151_v8, %v5050_v9 }
 0x1fc   :  { %v2225_v11 = vand.u32 4294901760, %v5053_v10 }
 0x1fe   :  { %v2226_v12 = vsub.f32 %v5053_v10, %v2225_v11 }
 0x200   :  { %v2227_v13 = vand.u32 4294901760, %v2226_v12 }
 0x2a8   :  { %v4565_v26 = vpop.f32.mrf.mxu0 }
 0x2a9   :  { %v1188_v30 = vadd.f32 %v4565_v26, %v1096_v29 }
 0x2aa   :  { %v1177_v27 = vpop.f32.mrf.mxu0 }
 0x2ab   :  { %v1178_v33 = vadd.f32 %v1177_v27, %v1091_v31  ;;  %v4268_v31 = vld [vmem:[%s5145_s1 + $0x48] sm:$0xff] }
 0x2ad   :  { %v4579_v28 = vpop.f32.mrf.mxu0 }
 0x2af   :  { %v1350_v35 = vpop.f32.mrf.mxu0 }
 0x2b0   :  { %v4572_v32 = vpop.f32.mrf.mxu1 }
 0x2b1   :  { %v1275_v34 = vadd.f32 %v4572_v32, %v1188_v30 }
 0x2b2   :  { %v1268_v36 = vpop.f32.mrf.mxu1 }
 0x2b3   :  { %v1358_v37 = vadd.f32 %v4579_v28, %v1275_v34  ;;  %v1269_v38 = vadd.f32 %v1268_v36, %v1178_v33  ;;  %v4593_v41 = vpop.f32.mrf.mxu0 }
 0x2b5   :  { %v1351_v39 = vadd.f32 %v1350_v35, %v1269_v38  ;;  %v4586_v40 = vpop.f32.mrf.mxu1  ;;  %v1517_v47 = vpop.f32.mrf.mxu0 }
 0x2b6   :  { %v1441_v42 = vadd.f32 %v4586_v40, %v1358_v37  ;;  %v2154_v37 = vsel %vm45_vm0, %v4268_v31, 0 }
 0x2b7   :  { %v1432_v44 = vpop.f32.mrf.mxu1 }
 0x2b8   :  { %v1524_v45 = vadd.f32 %v4593_v41, %v1441_v42  ;;  %v1433_v46 = vadd.f32 %v1432_v44, %v1351_v39  ;;  %v2233_v42 = vand.u32 4294901760, %v2154_v37 }
 0x2b9   :  { %v4600_v48 = vpop.f32.mrf.mxu1 }
 0x2ba   :  { %v1518_v50 = vadd.f32 %v1517_v47, %v1433_v46  ;;  %v1603_v51 = vadd.f32 %v4600_v48, %v1524_v45  ;;  %v2234_v43 = vsub.f32 %v2154_v37, %v2233_v42 }
 0x2bb   :  { %v1596_v52 = vpop.f32.mrf.mxu1 }
 0x2bc   :  { %4826 = vtanh.f32 %v1603_v51  ;;  %v1597_v53 = vadd.f32 %v1596_v52, %v1518_v50  ;;  %v2235_v44 = vand.u32 4294901760, %v2234_v43 }
 0x2be   :  { %4828 = vtanh.f32 %v1597_v53  ;;  %v2236_v45 = vsub.f32 %v2234_v43, %v2235_v44 }
 0x2c0   :  { %v2237_v50 = vand.u32 4294901760, %v2236_v45 }
 0x2c9   :  { %v4827_v58 = vpop.eup %4826 }
 0x2ca   :  { %v1659_v59 = vand.u32 4294901760, %v4827_v58 }
 0x2cb   :  { %v4829_v60 = vpop.eup %4828 }
 0x2cc   :  { %v1662_v61 = vand.u32 4294901760, %v4829_v60  ;;  %4601 = vmatprep.subr.mxu0 %v1659_v59  ;;  %v1747_v63 = vsub.f32 %v4827_v58, %v1659_v59 }
 0x2cd   :  { %4602 = vmatpush3.msra.mxu0 %v1659_v59 }
 0x2ce   :  { %4603 = vmatprep.subr.mxu0 %v1662_v61  ;;  %v1754_v0 = vsub.f32 %v4829_v60, %v1662_v61  ;;  %v1748_v1 = vand.u32 4294901760, %v1747_v63 }
 0x2cf   :  { %4604 = vmatpush3.msra.mxu0 %v1662_v61 }
 0x2d0   :  { %4606 = vmatmul.mubr.f32.vlgmr.msra.gmra.mxu0 %v1711_v62  ;;  %4615 = vmatprep.subr.mxu0 %v1747_v63  ;;  %v1749_v2 = vsub.f32 %v1747_v63, %v1748_v1  ;;  %v1755_v3 = vand.u32 4294901760, %v1754_v0 }
 0x2d1   :  { %4616 = vmatpush3.msra.mxu0 %v1747_v63  ;;  %4619 = vmatprep.mubr.f32.mxu0 %v5030_v22 }
 0x2d2   :  { %4617 = vmatprep.subr.mxu0 %v1754_v0  ;;  %v1750_v4 = vand.u32 4294901760, %v1749_v2  ;;  %v1756_v5 = vsub.f32 %v1754_v0, %v1755_v3 }
 0x2d3   :  { %4618 = vmatpush3.msra.mxu0 %v1754_v0 }
 0x2d4   :  { %4608 = vmatprep.subr.mxu1 %v1750_v4  ;;  %4629 = vmatprep.subr.mxu0 %v1748_v1  ;;  %v1757_v6 = vand.u32 4294901760, %v1756_v5  ;;  %v2148_v5 = vpop.permute.xlu0 %2147 }
 0x2d5   :  { %4609 = vmatpush3.msra.mxu1 %v1750_v4  ;;  %4620 = vmatmul.mubr.f32.vlgmr.msra.gmra.mxu0 %v1708_v55 }
 0x2d6   :  { %4630 = vmatpush3.msra.mxu0 %v1748_v1  ;;  %4610 = vmatprep.subr.mxu1 %v1757_v6 }
 0x2d7   :  { %4631 = vmatprep.subr.mxu0 %v1755_v3  ;;  %4611 = vmatpush3.msra.mxu1 %v1757_v6 }
 0x2d8   :  { %4632 = vmatpush3.msra.mxu0 %v1755_v3  ;;  %4613 = vmatmul.mubr.f32.vlgmr.msra.gmra.mxu1 %v1707_v54 }
 0x2d9   :  { %4622 = vmatprep.subr.mxu1 %v1659_v59  ;;  %4626 = vmatprep.mubr.f32.mxu1 %v1699_v23 }
 0x2da   :  { %4623 = vmatpush3.msra.mxu1 %v1659_v59  ;;  %4633 = vmatprep.mubr.f32.mxu0 %v5027_v21 }
 0x2db   :  { %4624 = vmatprep.subr.mxu1 %v1662_v61  ;;  %4634 = vmatmul.mubr.f32.vlgmr.msra.gmra.mxu0 %v1707_v54 }
 0x2dc   :  { %4625 = vmatpush3.msra.mxu1 %v1662_v61  ;;  %4647 = vmatprep.mubr.f32.mxu0 %v2227_v13 }
 0x2dd   :  { %4627 = vmatmul.mubr.f32.vlgmr.msra.gmra.mxu1 %v1709_v56  ;;  %4636 = vmatprep.subr.mxu1 %v1659_v59 }
 0x2de   :  { %4637 = vmatpush3.msra.mxu1 %v1659_v59  ;;  %4640 = vmatprep.mubr.f32.mxu1 %v5027_v21  ;;  %v4271_v59 = vld [vmem:[%s5145_s1 + $0x50] sm:$0xff] }
 0x2df   :  { %4638 = vmatprep.subr.mxu1 %v1662_v61  ;;  %v2677_v60 = vsel %vm45_vm0, %v4271_v59, 0  ;;  %v2669_v59 = vpop.permute.xlu1 %2668 }
 0x2e0   :  { %4639 = vmatpush3.msra.mxu1 %v1662_v61  ;;  %v5073_v61 = vand.u32 4294901760, %v2677_v60 }
 0x2e1   :  { %4641 = vmatmul.mubr.f32.vlgmr.msra.gmra.mxu1 %v1707_v54 }
 0x2e2   :  { %4654 = vmatprep.mubr.f32.mxu1 %v5050_v9  ;;  %v5076_v62 = vsub.f32 %v2677_v60, %v5073_v61 }
 0x2e4   :  { %v2751_v63 = vand.u32 4294901760, %v5076_v62 }
 0x2e6   :  { %v2752_v0 = vsub.f32 %v5076_v62, %v2751_v63 }
 0x2e8   :  { %v2753_v1 = vand.u32 4294901760, %v2752_v0 }
 0x390   :  { %v4607_v14 = vpop.f32.mrf.mxu0 }
 0x391   :  { %v1714_v18 = vadd.f32 %v4607_v14, %v1622_v17 }
 0x392   :  { %v1703_v15 = vpop.f32.mrf.mxu0 }
 0x393   :  { %v1704_v21 = vadd.f32 %v1703_v15, %v1617_v19  ;;  %v4272_v19 = vld [vmem:[%s5145_s1 + $0x58] sm:$0xff] }
 0x395   :  { %v4621_v16 = vpop.f32.mrf.mxu0 }
 0x397   :  { %v1876_v23 = vpop.f32.mrf.mxu0 }
 0x398   :  { %v4614_v20 = vpop.f32.mrf.mxu1 }
 0x399   :  { %v1801_v22 = vadd.f32 %v4614_v20, %v1714_v18 }
 0x39a   :  { %v1794_v24 = vpop.f32.mrf.mxu1 }
 0x39b   :  { %v1884_v25 = vadd.f32 %v4621_v16, %v1801_v22  ;;  %v1795_v26 = vadd.f32 %v1794_v24, %v1704_v21  ;;  %v4635_v29 = vpop.f32.mrf.mxu0 }
 0x39d   :  { %v1877_v27 = vadd.f32 %v1876_v23, %v1795_v26  ;;  %v4628_v28 = vpop.f32.mrf.mxu1  ;;  %v2043_v35 = vpop.f32.mrf.mxu0 }
 0x39e   :  { %v1967_v30 = vadd.f32 %v4628_v28, %v1884_v25  ;;  %v2680_v25 = vsel %vm45_vm0, %v4272_v19, 0 }
 0x39f   :  { %v1958_v32 = vpop.f32.mrf.mxu1 }
 0x3a0   :  { %v2050_v33 = vadd.f32 %v4635_v29, %v1967_v30  ;;  %v1959_v34 = vadd.f32 %v1958_v32, %v1877_v27  ;;  %v2759_v30 = vand.u32 4294901760, %v2680_v25 }
 0x3a1   :  { %v4642_v36 = vpop.f32.mrf.mxu1 }
 0x3a2   :  { %v2044_v38 = vadd.f32 %v2043_v35, %v1959_v34  ;;  %v2129_v39 = vadd.f32 %v4642_v36, %v2050_v33  ;;  %v2760_v31 = vsub.f32 %v2680_v25, %v2759_v30 }
 0x3a3   :  { %v2122_v40 = vpop.f32.mrf.mxu1 }
 0x3a4   :  { %4830 = vtanh.f32 %v2129_v39  ;;  %v2123_v41 = vadd.f32 %v2122_v40, %v2044_v38  ;;  %v2761_v32 = vand.u32 4294901760, %v2760_v31 }
 0x3a6   :  { %4832 = vtanh.f32 %v2123_v41  ;;  %v2762_v33 = vsub.f32 %v2760_v31, %v2761_v32 }
 0x3a8   :  { %v2763_v38 = vand.u32 4294901760, %v2762_v33 }
 0x3b1   :  { %v4831_v46 = vpop.eup %4830 }
 0x3b2   :  { %v2185_v47 = vand.u32 4294901760, %v4831_v46 }
 0x3b3   :  { %v4833_v48 = vpop.eup %4832 }
 0x3b4   :  { %v2188_v49 = vand.u32 4294901760, %v4833_v48  ;;  %4643 = vmatprep.subr.mxu0 %v2185_v47  ;;  %v2273_v51 = vsub.f32 %v4831_v46, %v2185_v47 }
 0x3b5   :  { %4644 = vmatpush3.msra.mxu0 %v2185_v47 }
 0x3b6   :  { %4645 = vmatprep.subr.mxu0 %v2188_v49  ;;  %v2280_v52 = vsub.f32 %v4833_v48, %v2188_v49  ;;  %v2274_v53 = vand.u32 4294901760, %v2273_v51 }
 0x3b7   :  { %4646 = vmatpush3.msra.mxu0 %v2188_v49 }
 0x3b8   :  { %4648 = vmatmul.mubr.f32.vlgmr.msra.gmra.mxu0 %v2237_v50  ;;  %4657 = vmatprep.subr.mxu0 %v2273_v51  ;;  %v2275_v54 = vsub.f32 %v2273_v51, %v2274_v53  ;;  %v2281_v55 = vand.u32 4294901760, %v2280_v52 }
 0x3b9   :  { %4658 = vmatpush3.msra.mxu0 %v2273_v51  ;;  %4661 = vmatprep.mubr.f32.mxu0 %v5053_v10 }
 0x3ba   :  { %4659 = vmatprep.subr.mxu0 %v2280_v52  ;;  %v2276_v56 = vand.u32 4294901760, %v2275_v54  ;;  %v2282_v57 = vsub.f32 %v2280_v52, %v2281_v55 }
 0x3bb   :  { %4660 = vmatpush3.msra.mxu0 %v2280_v52 }
 0x3bc   :  { %4650 = vmatprep.subr.mxu1 %v2276_v56  ;;  %4671 = vmatprep.subr.mxu0 %v2274_v53  ;;  %v2283_v58 = vand.u32 4294901760, %v2282_v57  ;;  %v2674_v57 = vpop.permute.xlu0 %2673 }
 0x3bd   :  { %4651 = vmatpush3.msra.mxu1 %v2276_v56  ;;  %4662 = vmatmul.mubr.f32.vlgmr.msra.gmra.mxu0 %v2234_v43 }
 0x3be   :  { %4672 = vmatpush3.msra.mxu0 %v2274_v53  ;;  %4652 = vmatprep.subr.mxu1 %v2283_v58 }
 0x3bf   :  { %4673 = vmatprep.subr.mxu0 %v2281_v55  ;;  %4653 = vmatpush3.msra.mxu1 %v2283_v58 }
 0x3c0   :  { %4674 = vmatpush3.msra.mxu0 %v2281_v55  ;;  %4655 = vmatmul.mubr.f32.vlgmr.msra.gmra.mxu1 %v2233_v42 }
 0x3c1   :  { %4664 = vmatprep.subr.mxu1 %v2185_v47  ;;  %4668 = vmatprep.mubr.f32.mxu1 %v2225_v11 }
 0x3c2   :  { %4665 = vmatpush3.msra.mxu1 %v2185_v47  ;;  %4675 = vmatprep.mubr.f32.mxu0 %v5050_v9 }
 0x3c3   :  { %4666 = vmatprep.subr.mxu1 %v2188_v49  ;;  %4676 = vmatmul.mubr.f32.vlgmr.msra.gmra.mxu0 %v2233_v42 }
 0x3c4   :  { %4667 = vmatpush3.msra.mxu1 %v2188_v49  ;;  %4689 = vmatprep.mubr.f32.mxu0 %v2753_v1 }
 0x3c5   :  { %4669 = vmatmul.mubr.f32.vlgmr.msra.gmra.mxu1 %v2235_v44  ;;  %4678 = vmatprep.subr.mxu1 %v2185_v47 }
 0x3c6   :  { %4679 = vmatpush3.msra.mxu1 %v2185_v47  ;;  %4682 = vmatprep.mubr.f32.mxu1 %v5050_v9  ;;  %v4275_v47 = vld [vmem:[%s5145_s1 + $0x60] sm:$0xff] }
 0x3c7   :  { %4680 = vmatprep.subr.mxu1 %v2188_v49  ;;  %v3203_v48 = vsel %vm45_vm0, %v4275_v47, 0  ;;  %v3195_v47 = vpop.permute.xlu1 %3194 }
 0x3c8   :  { %4681 = vmatpush3.msra.mxu1 %v2188_v49  ;;  %v5096_v49 = vand.u32 4294901760, %v3203_v48 }
 0x3c9   :  { %4683 = vmatmul.mubr.f32.vlgmr.msra.gmra.mxu1 %v2233_v42 }
 0x3ca   :  { %4696 = vmatprep.mubr.f32.mxu1 %v5073_v61  ;;  %v5099_v50 = vsub.f32 %v3203_v48, %v5096_v49 }
 0x3cc   :  { %v3277_v51 = vand.u32 4294901760, %v5099_v50 }
 0x3ce   :  { %v3278_v52 = vsub.f32 %v5099_v50, %v3277_v51 }
 0x3d0   :  { %v3279_v53 = vand.u32 4294901760, %v3278_v52 }
 0x478   :  { %v4649_v2 = vpop.f32.mrf.mxu0 }
 0x479   :  { %v2240_v6 = vadd.f32 %v4649_v2, %v2148_v5 }
 0x47a   :  { %v2229_v3 = vpop.f32.mrf.mxu0 }
 0x47b   :  { %v2230_v9 = vadd.f32 %v2229_v3, %v2143_v7  ;;  %v4276_v7 = vld [vmem:[%s5145_s1 + $0x68] sm:$0xff] }
 0x47d   :  { %v4663_v4 = vpop.f32.mrf.mxu0 }
 0x47f   :  { %v2402_v11 = vpop.f32.mrf.mxu0 }
 0x480   :  { %v4656_v8 = vpop.f32.mrf.mxu1 }
 0x481   :  { %v2327_v10 = vadd.f32 %v4656_v8, %v2240_v6 }
 0x482   :  { %v2320_v12 = vpop.f32.mrf.mxu1 }
 0x483   :  { %v2410_v13 = vadd.f32 %v4663_v4, %v2327_v10  ;;  %v2321_v14 = vadd.f32 %v2320_v12, %v2230_v9  ;;  %v4677_v17 = vpop.f32.mrf.mxu0 }
 0x485   :  { %v2403_v15 = vadd.f32 %v2402_v11, %v2321_v14  ;;  %v4670_v16 = vpop.f32.mrf.mxu1  ;;  %v2569_v23 = vpop.f32.mrf.mxu0 }
 0x486   :  { %v2493_v18 = vadd.f32 %v4670_v16, %v2410_v13  ;;  %v3206_v13 = vsel %vm45_vm0, %v4276_v7, 0 }
 0x487   :  { %v2484_v20 = vpop.f32.mrf.mxu1 }
 0x488   :  { %v2576_v21 = vadd.f32 %v4677_v17, %v2493_v18  ;;  %v2485_v22 = vadd.f32 %v2484_v20, %v2403_v15  ;;  %v3285_v18 = vand.u32 4294901760, %v3206_v13 }
 0x489   :  { %v4684_v24 = vpop.f32.mrf.mxu1 }
 0x48a   :  { %v2570_v26 = vadd.f32 %v2569_v23, %v2485_v22  ;;  %v2655_v27 = vadd.f32 %v4684_v24, %v2576_v21  ;;  %v3286_v19 = vsub.f32 %v3206_v13, %v3285_v18 }
 0x48b   :  { %v2648_v28 = vpop.f32.mrf.mxu1 }
 0x48c   :  { %4834 = vtanh.f32 %v2655_v27  ;;  %v2649_v29 = vadd.f32 %v2648_v28, %v2570_v26  ;;  %v3287_v20 = vand.u32 4294901760, %v3286_v19 }
 0x48e   :  { %4836 = vtanh.f32 %v2649_v29  ;;  %v3288_v21 = vsub.f32 %v3286_v19, %v3287_v20 }
 0x490   :  { %v3289_v26 = vand.u32 4294901760, %v3288_v21 }
 0x499   :  { %v4835_v34 = vpop.eup %4834 }
 0x49a   :  { %v2711_v35 = vand.u32 4294901760, %v4835_v34 }
 0x49b   :  { %v4837_v36 = vpop.eup %4836 }
 0x49c   :  { %v2714_v37 = vand.u32 4294901760, %v4837_v36  ;;  %4685 = vmatprep.subr.mxu0 %v2711_v35  ;;  %v2799_v39 = vsub.f32 %v4835_v34, %v2711_v35 }
 0x49d   :  { %4686 = vmatpush3.msra.mxu0 %v2711_v35 }
 0x49e   :  { %4687 = vmatprep.subr.mxu0 %v2714_v37  ;;  %v2806_v40 = vsub.f32 %v4837_v36, %v2714_v37  ;;  %v2800_v41 = vand.u32 4294901760, %v2799_v39 }
 0x49f   :  { %4688 = vmatpush3.msra.mxu0 %v2714_v37 }
 0x4a0   :  { %4690 = vmatmul.mubr.f32.vlgmr.msra.gmra.mxu0 %v2763_v38  ;;  %4699 = vmatprep.subr.mxu0 %v2799_v39  ;;  %v2801_v42 = vsub.f32 %v2799_v39, %v2800_v41  ;;  %v2807_v43 = vand.u32 4294901760, %v2806_v40 }
 0x4a1   :  { %4700 = vmatpush3.msra.mxu0 %v2799_v39  ;;  %4703 = vmatprep.mubr.f32.mxu0 %v5076_v62 }
 0x4a2   :  { %4701 = vmatprep.subr.mxu0 %v2806_v40  ;;  %v2802_v44 = vand.u32 4294901760, %v2801_v42  ;;  %v2808_v45 = vsub.f32 %v2806_v40, %v2807_v43 }
 0x4a3   :  { %4702 = vmatpush3.msra.mxu0 %v2806_v40 }
 0x4a4   :  { %4692 = vmatprep.subr.mxu1 %v2802_v44  ;;  %4713 = vmatprep.subr.mxu0 %v2800_v41  ;;  %v2809_v46 = vand.u32 4294901760, %v2808_v45  ;;  %v3200_v45 = vpop.permute.xlu0 %3199 }
 0x4a5   :  { %4693 = vmatpush3.msra.mxu1 %v2802_v44  ;;  %4704 = vmatmul.mubr.f32.vlgmr.msra.gmra.mxu0 %v2760_v31 }
 0x4a6   :  { %4714 = vmatpush3.msra.mxu0 %v2800_v41  ;;  %4694 = vmatprep.subr.mxu1 %v2809_v46 }
 0x4a7   :  { %4715 = vmatprep.subr.mxu0 %v2807_v43  ;;  %4695 = vmatpush3.msra.mxu1 %v2809_v46 }
 0x4a8   :  { %4716 = vmatpush3.msra.mxu0 %v2807_v43  ;;  %4697 = vmatmul.mubr.f32.vlgmr.msra.gmra.mxu1 %v2759_v30 }
 0x4a9   :  { %4706 = vmatprep.subr.mxu1 %v2711_v35  ;;  %4710 = vmatprep.mubr.f32.mxu1 %v2751_v63 }
 0x4aa   :  { %4707 = vmatpush3.msra.mxu1 %v2711_v35  ;;  %4717 = vmatprep.mubr.f32.mxu0 %v5073_v61 }
 0x4ab   :  { %4708 = vmatprep.subr.mxu1 %v2714_v37  ;;  %4718 = vmatmul.mubr.f32.vlgmr.msra.gmra.mxu0 %v2759_v30 }
 0x4ac   :  { %4709 = vmatpush3.msra.mxu1 %v2714_v37  ;;  %4731 = vmatprep.mubr.f32.mxu0 %v3279_v53 }
 0x4ad   :  { %4711 = vmatmul.mubr.f32.vlgmr.msra.gmra.mxu1 %v2761_v32  ;;  %4720 = vmatprep.subr.mxu1 %v2711_v35 }
 0x4ae   :  { %4721 = vmatpush3.msra.mxu1 %v2711_v35  ;;  %4724 = vmatprep.mubr.f32.mxu1 %v5073_v61  ;;  %v4279_v35 = vld [vmem:[%s5145_s1 + $0x70] sm:$0xff] }
 0x4af   :  { %4722 = vmatprep.subr.mxu1 %v2714_v37  ;;  %v3729_v36 = vsel %vm45_vm0, %v4279_v35, 0 }
 0x4b0   :  { %4723 = vmatpush3.msra.mxu1 %v2714_v37  ;;  %v5119_v37 = vand.u32 4294901760, %v3729_v36 }
 0x4b1   :  { %4725 = vmatmul.mubr.f32.vlgmr.msra.gmra.mxu1 %v2759_v30 }
 0x4b2   :  { %4738 = vmatprep.mubr.f32.mxu1 %v5096_v49  ;;  %v5122_v38 = vsub.f32 %v3729_v36, %v5119_v37 }
 0x4b4   :  { %v3803_v39 = vand.u32 4294901760, %v5122_v38 }
 0x4b6   :  { %v3804_v40 = vsub.f32 %v5122_v38, %v3803_v39 }
 0x4b8   :  { %v3805_v41 = vand.u32 4294901760, %v3804_v40 }
 0x560   :  { %v4691_v54 = vpop.f32.mrf.mxu0 }
 0x561   :  { %v2766_v58 = vadd.f32 %v4691_v54, %v2674_v57 }
 0x562   :  { %v2755_v55 = vpop.f32.mrf.mxu0 }
 0x563   :  { %v2756_v61 = vadd.f32 %v2755_v55, %v2669_v59  ;;  %v4280_v59 = vld [vmem:[%s5145_s1 + $0x78] sm:$0xff]  ;;  %s4894_s1 = smov [#allocation5]  }
 0x564   :  { %s4243_s29 = sshll.u32 %s4894_s1, 4  ;;  %s4244_s29 = int_to_ptr.vmem [resolvable:$true] %s4243_s29 }
 0x565   :  { %v4705_v56 = vpop.f32.mrf.mxu0  ;;  %s4866_s30 = scalar_lea.vmem %s4244_s29, 256  ;;  %p4871_p6 = scmp.lt.s32.totalorder %s4244_s29, %s4244_s29 }
 0x566   :  { %p4867_p5 = scmp.ne.s32.totalorder %s4244_s29, %s4866_s30  ;;  %p4872_p7 = scmp.lt.s32.totalorder %s4866_s30, %s4866_s30 }
 0x567   :  { %v2928_v63 = vpop.f32.mrf.mxu0 }
 0x568   :  { %v4698_v60 = vpop.f32.mrf.mxu1  ;;  %p4873_p8 = por %p4872_p7, %p4871_p6 }
 0x569   :  { %v2853_v62 = vadd.f32 %v4698_v60, %v2766_v58 }
 0x56a   :  { %v2846_v0 = vpop.f32.mrf.mxu1  ;;  %p4874_p9 = pnand %p4873_p8, %p4867_p5 }
 0x56b   :  { %v2936_v1 = vadd.f32 %v4705_v56, %v2853_v62  ;;  %v2847_v2 = vadd.f32 %v2846_v0, %v2756_v61  ;;  %v4719_v5 = vpop.f32.mrf.mxu0 }
 0x56d   :  { %v2929_v3 = vadd.f32 %v2928_v63, %v2847_v2  ;;  %v4712_v4 = vpop.f32.mrf.mxu1  ;;  %v3095_v11 = vpop.f32.mrf.mxu0 }
 0x56e   :  { %v3019_v6 = vadd.f32 %v4712_v4, %v2936_v1  ;;  %v3732_v1 = vsel %vm45_vm0, %v4280_v59, 0 }
 0x56f   :  { %v3010_v8 = vpop.f32.mrf.mxu1 }
 0x570   :  { %v3102_v9 = vadd.f32 %v4719_v5, %v3019_v6  ;;  %v3011_v10 = vadd.f32 %v3010_v8, %v2929_v3  ;;  %v3811_v6 = vand.u32 4294901760, %v3732_v1 }
 0x571   :  { %v4726_v12 = vpop.f32.mrf.mxu1 }
 0x572   :  { %v3096_v14 = vadd.f32 %v3095_v11, %v3011_v10  ;;  %v3181_v15 = vadd.f32 %v4726_v12, %v3102_v9  ;;  %v3812_v7 = vsub.f32 %v3732_v1, %v3811_v6 }
 0x573   :  { %v3174_v16 = vpop.f32.mrf.mxu1 }
 0x574   :  { %4838 = vtanh.f32 %v3181_v15  ;;  %v3175_v17 = vadd.f32 %v3174_v16, %v3096_v14  ;;  %v3813_v8 = vand.u32 4294901760, %v3812_v7 }
 0x576   :  { %4840 = vtanh.f32 %v3175_v17  ;;  %v3814_v9 = vsub.f32 %v3812_v7, %v3813_v8 }
 0x578   :  { %v3815_v14 = vand.u32 4294901760, %v3814_v9 }
 0x581   :  { %v4839_v22 = vpop.eup %4838 }
 0x582   :  { %v3237_v23 = vand.u32 4294901760, %v4839_v22 }
 0x583   :  { %v4841_v24 = vpop.eup %4840 }
 0x584   :  { %v3240_v25 = vand.u32 4294901760, %v4841_v24  ;;  %4727 = vmatprep.subr.mxu0 %v3237_v23  ;;  %v3325_v27 = vsub.f32 %v4839_v22, %v3237_v23 }
 0x585   :  { %4728 = vmatpush3.msra.mxu0 %v3237_v23 }
 0x586   :  { %4729 = vmatprep.subr.mxu0 %v3240_v25  ;;  %v3332_v28 = vsub.f32 %v4841_v24, %v3240_v25  ;;  %v3326_v29 = vand.u32 4294901760, %v3325_v27 }
 0x587   :  { %4730 = vmatpush3.msra.mxu0 %v3240_v25 }
 0x588   :  { %4732 = vmatmul.mubr.f32.vlgmr.msra.gmra.mxu0 %v3289_v26  ;;  %4741 = vmatprep.subr.mxu0 %v3325_v27  ;;  %v3327_v30 = vsub.f32 %v3325_v27, %v3326_v29  ;;  %v3333_v31 = vand.u32 4294901760, %v3332_v28  ;;  %v3726_v26 = vpop.permute.xlu1 %3725 }
 0x589   :  { %4742 = vmatpush3.msra.mxu0 %v3325_v27  ;;  %4745 = vmatprep.mubr.f32.mxu0 %v5099_v50 }
 0x58a   :  { %4743 = vmatprep.subr.mxu0 %v3332_v28  ;;  %v3328_v32 = vand.u32 4294901760, %v3327_v30  ;;  %v3334_v33 = vsub.f32 %v3332_v28, %v3333_v31 }
 0x58b   :  { %4744 = vmatpush3.msra.mxu0 %v3332_v28  ;;  %v3721_v28 = vpop.permute.xlu0 %3720 }
 0x58c   :  { %4734 = vmatprep.subr.mxu1 %v3328_v32  ;;  %4755 = vmatprep.subr.mxu0 %v3326_v29  ;;  %v3335_v34 = vand.u32 4294901760, %v3334_v33 }
 0x58d   :  { %4735 = vmatpush3.msra.mxu1 %v3328_v32  ;;  %4746 = vmatmul.mubr.f32.vlgmr.msra.gmra.mxu0 %v3286_v19 }
 0x58e   :  { %4756 = vmatpush3.msra.mxu0 %v3326_v29  ;;  %4736 = vmatprep.subr.mxu1 %v3335_v34 }
 0x58f   :  { %4757 = vmatprep.subr.mxu0 %v3333_v31  ;;  %4737 = vmatpush3.msra.mxu1 %v3335_v34 }
 0x590   :  { %4758 = vmatpush3.msra.mxu0 %v3333_v31  ;;  %4739 = vmatmul.mubr.f32.vlgmr.msra.gmra.mxu1 %v3285_v18 }
 0x591   :  { %4748 = vmatprep.subr.mxu1 %v3237_v23  ;;  %4752 = vmatprep.mubr.f32.mxu1 %v3277_v51 }
 0x592   :  { %4749 = vmatpush3.msra.mxu1 %v3237_v23  ;;  %4759 = vmatprep.mubr.f32.mxu0 %v5096_v49 }
 0x593   :  { %4750 = vmatprep.subr.mxu1 %v3240_v25  ;;  %4760 = vmatmul.mubr.f32.vlgmr.msra.gmra.mxu0 %v3285_v18 }
 0x594   :  { %4751 = vmatpush3.msra.mxu1 %v3240_v25  ;;  %4773 = vmatprep.mubr.f32.mxu0 %v3805_v41 }
 0x595   :  { %4753 = vmatmul.mubr.f32.vlgmr.msra.gmra.mxu1 %v3287_v20  ;;  %4762 = vmatprep.subr.mxu1 %v3237_v23 }
 0x596   :  { %4763 = vmatpush3.msra.mxu1 %v3237_v23  ;;  %4766 = vmatprep.mubr.f32.mxu1 %v5096_v49 }
 0x597   :  { %4764 = vmatprep.subr.mxu1 %v3240_v25 }
 0x598   :  { %4765 = vmatpush3.msra.mxu1 %v3240_v25 }
 0x599   :  { %4767 = vmatmul.mubr.f32.vlgmr.msra.gmra.mxu1 %v3285_v18 }
 0x59a   :  { %4780 = vmatprep.mubr.f32.mxu1 %v5119_v37 }
 0x648   :  { %v4733_v42 = vpop.f32.mrf.mxu0 }
 0x649   :  { %v3292_v46 = vadd.f32 %v4733_v42, %v3200_v45 }
 0x64a   :  { %v3281_v43 = vpop.f32.mrf.mxu0 }
 0x64b   :  { %v3282_v49 = vadd.f32 %v3281_v43, %v3195_v47 }
 0x64d   :  { %v4747_v44 = vpop.f32.mrf.mxu0 }
 0x64f   :  { %v3454_v51 = vpop.f32.mrf.mxu0 }
 0x650   :  { %v4740_v48 = vpop.f32.mrf.mxu1 }
 0x651   :  { %v3379_v50 = vadd.f32 %v4740_v48, %v3292_v46 }
 0x652   :  { %v3372_v52 = vpop.f32.mrf.mxu1 }
 0x653   :  { %v3462_v53 = vadd.f32 %v4747_v44, %v3379_v50  ;;  %v3373_v54 = vadd.f32 %v3372_v52, %v3282_v49  ;;  %v4761_v57 = vpop.f32.mrf.mxu0 }
 0x655   :  { %v3455_v55 = vadd.f32 %v3454_v51, %v3373_v54  ;;  %v4754_v56 = vpop.f32.mrf.mxu1  ;;  %v3621_v63 = vpop.f32.mrf.mxu0 }
 0x656   :  { %v3545_v58 = vadd.f32 %v4754_v56, %v3462_v53 }
 0x657   :  { %v3536_v60 = vpop.f32.mrf.mxu1 }
 0x658   :  { %v3628_v61 = vadd.f32 %v4761_v57, %v3545_v58  ;;  %v3537_v62 = vadd.f32 %v3536_v60, %v3455_v55 }
 0x659   :  { %v4768_v0 = vpop.f32.mrf.mxu1 }
 0x65a   :  { %v3622_v2 = vadd.f32 %v3621_v63, %v3537_v62  ;;  %v3707_v3 = vadd.f32 %v4768_v0, %v3628_v61 }
 0x65b   :  { %v3700_v4 = vpop.f32.mrf.mxu1 }
 0x65c   :  { %4842 = vtanh.f32 %v3707_v3  ;;  %v3701_v5 = vadd.f32 %v3700_v4, %v3622_v2 }
 0x65e   :  { %4844 = vtanh.f32 %v3701_v5 }
 0x669   :  { %v4843_v10 = vpop.eup %4842 }
 0x66a   :  { %v3763_v11 = vand.u32 4294901760, %v4843_v10 }
 0x66b   :  { %v4845_v12 = vpop.eup %4844 }
 0x66c   :  { %v3766_v13 = vand.u32 4294901760, %v4845_v12  ;;  %4769 = vmatprep.subr.mxu0 %v3763_v11  ;;  %v3851_v15 = vsub.f32 %v4843_v10, %v3763_v11 }
 0x66d   :  { %4770 = vmatpush3.msra.mxu0 %v3763_v11 }
 0x66e   :  { %4771 = vmatprep.subr.mxu0 %v3766_v13  ;;  %v3858_v16 = vsub.f32 %v4845_v12, %v3766_v13  ;;  %v3852_v17 = vand.u32 4294901760, %v3851_v15 }
 0x66f   :  { %4772 = vmatpush3.msra.mxu0 %v3766_v13 }
 0x670   :  { %4774 = vmatmul.mubr.f32.vlgmr.msra.gmra.mxu0 %v3815_v14  ;;  %4783 = vmatprep.subr.mxu0 %v3851_v15  ;;  %v3853_v18 = vsub.f32 %v3851_v15, %v3852_v17  ;;  %v3859_v19 = vand.u32 4294901760, %v3858_v16 }
 0x671   :  { %4784 = vmatpush3.msra.mxu0 %v3851_v15  ;;  %4787 = vmatprep.mubr.f32.mxu0 %v5122_v38 }
 0x672   :  { %4785 = vmatprep.subr.mxu0 %v3858_v16  ;;  %v3854_v20 = vand.u32 4294901760, %v3853_v18  ;;  %v3860_v21 = vsub.f32 %v3858_v16, %v3859_v19 }
 0x673   :  { %4786 = vmatpush3.msra.mxu0 %v3858_v16 }
 0x674   :  { %4776 = vmatprep.subr.mxu1 %v3854_v20  ;;  %4797 = vmatprep.subr.mxu0 %v3852_v17  ;;  %v3861_v22 = vand.u32 4294901760, %v3860_v21 }
 0x675   :  { %4777 = vmatpush3.msra.mxu1 %v3854_v20  ;;  %4788 = vmatmul.mubr.f32.vlgmr.msra.gmra.mxu0 %v3812_v7 }
 0x676   :  { %4798 = vmatpush3.msra.mxu0 %v3852_v17  ;;  %4778 = vmatprep.subr.mxu1 %v3861_v22 }
 0x677   :  { %4799 = vmatprep.subr.mxu0 %v3859_v19  ;;  %4779 = vmatpush3.msra.mxu1 %v3861_v22 }
 0x678   :  { %4800 = vmatpush3.msra.mxu0 %v3859_v19  ;;  %4781 = vmatmul.mubr.f32.vlgmr.msra.gmra.mxu1 %v3811_v6 }
 0x679   :  { %4790 = vmatprep.subr.mxu1 %v3763_v11  ;;  %4794 = vmatprep.mubr.f32.mxu1 %v3803_v39 }
 0x67a   :  { %4791 = vmatpush3.msra.mxu1 %v3763_v11  ;;  %4801 = vmatprep.mubr.f32.mxu0 %v5119_v37 }
 0x67b   :  { %4792 = vmatprep.subr.mxu1 %v3766_v13  ;;  %4802 = vmatmul.mubr.f32.vlgmr.msra.gmra.mxu0 %v3811_v6 }
 0x67c   :  { %4793 = vmatpush3.msra.mxu1 %v3766_v13 }
 0x67d   :  { %4795 = vmatmul.mubr.f32.vlgmr.msra.gmra.mxu1 %v3813_v8  ;;  %4804 = vmatprep.subr.mxu1 %v3763_v11 }
 0x67e   :  { %4805 = vmatpush3.msra.mxu1 %v3763_v11  ;;  %4808 = vmatprep.mubr.f32.mxu1 %v5119_v37 }
 0x67f   :  { %4806 = vmatprep.subr.mxu1 %v3766_v13 }
 0x680   :  { %4807 = vmatpush3.msra.mxu1 %v3766_v13 }
 0x681   :  { %4809 = vmatmul.mubr.f32.vlgmr.msra.gmra.mxu1 %v3811_v6 }
 0x730   :  { %v4775_v23 = vpop.f32.mrf.mxu0 }
 0x731   :  { %v3818_v27 = vadd.f32 %v4775_v23, %v3726_v26 }
 0x732   :  { %v3807_v24 = vpop.f32.mrf.mxu0 }
 0x733   :  { %v3808_v30 = vadd.f32 %v3807_v24, %v3721_v28 }
 0x735   :  { %v4789_v25 = vpop.f32.mrf.mxu0 }
 0x737   :  { %v3980_v32 = vpop.f32.mrf.mxu0 }
 0x738   :  { %v4782_v29 = vpop.f32.mrf.mxu1 }
 0x739   :  { %v3905_v31 = vadd.f32 %v4782_v29, %v3818_v27 }
 0x73a   :  { %v3898_v33 = vpop.f32.mrf.mxu1 }
 0x73b   :  { %v3988_v34 = vadd.f32 %v4789_v25, %v3905_v31  ;;  %v3899_v35 = vadd.f32 %v3898_v33, %v3808_v30  ;;  %v4803_v39 = vpop.f32.mrf.mxu0 }
 0x73d   :  { %v3981_v36 = vadd.f32 %v3980_v32, %v3899_v35  ;;  %v4796_v38 = vpop.f32.mrf.mxu1  ;;  %v4147_v43 = vpop.f32.mrf.mxu0 }
 0x73e   :  { %v4071_v37 = vadd.f32 %v4796_v38, %v3988_v34 }
 0x73f   :  { %v4062_v40 = vpop.f32.mrf.mxu1 }
 0x740   :  { %v4154_v41 = vadd.f32 %v4803_v39, %v4071_v37  ;;  %v4063_v42 = vadd.f32 %v4062_v40, %v3981_v36 }
 0x741   :  { %v4810_v44 = vpop.f32.mrf.mxu1 }
 0x742   :  { %v4148_v45 = vadd.f32 %v4147_v43, %v4063_v42  ;;  %v4233_v46 = vadd.f32 %v4810_v44, %v4154_v41 }
 0x743   :  { %v4226_v47 = vpop.f32.mrf.mxu1 }
 0x744   :  { %4237 = vst [vmem:[#allocation5 + $0x8] sm:$0x3] %v4233_v46  ;;  %v4227_v48 = vadd.f32 %v4226_v47, %v4148_v45 }
 0x746   :  { %4236 = vst [vmem:[#allocation5] sm:$0xff] %v4227_v48 }
 0x747   :  { %4877 = shalt.err (!%p4874_p9)
}
 0x748   :  { %4249 = dma.vmem_to_hbm [thread:$0]  %s4244_s29, 256, %s5147_s3, [#allocation4], %s4891_s15, %s4891_s15, %s4892_s16  }
 0x749   :  { %4888 = dma.done.wait [#allocation4], 256  }
 0x74a   :  { %4889 = vsyncadd [#allocation4], 4294967040 }
 0x74b   :  { %4253 = vsyncpa [#allocation3], 1 }
 0x74c   :  { %4254 = vsyncpa [#allocation4], 1 }

</bundles_post_ra>
